<compile_context>
chip_gen: v6e
topology: v6e:2x2x1
jax: 0.10.0
libtpu: 0.0.40
codegen_flags: <defaults>
</compile_context>

<pallas_src>
import jax
import jax.numpy as jnp
from jax.experimental import pallas as pl
from jax.experimental.pallas import tpu as pltpu


def _round_up(x, m):
    return ((x + m - 1) // m) * m


def _conv1x1_sigmoid_kernel(x_ref, w_ref, b_ref, o_ref):
    # x_ref: [1, Cin, T]   (one batch element, one spatial tile)
    # w_ref: [Cout, Cin]   (resident across the whole grid)
    # b_ref: [Cout, 1]     (resident across the whole grid)
    # o_ref: [1, Cout, T]
    x = x_ref[0]                                                   # [Cin, T]
    acc = jnp.dot(w_ref[...], x, preferred_element_type=jnp.float32)  # [Cout, T]
    acc = acc + b_ref[...]                                         # bias bcast over lanes
    o_ref[0] = jax.nn.sigmoid(acc).astype(o_ref.dtype)


def conv1x1_sigmoid(x_nchw, weight, bias, *, max_tile=512):
    """1x1 conv + sigmoid.

    x_nchw : [N, Cin, H, W]
    weight : [Cout, Cin, 1, 1]  (PyTorch Conv2d layout)
    bias   : [Cout]
    returns: [N, Cout, H, W]
    """
    N, Cin, H, W = x_nchw.shape
    Cout = weight.shape[0]
    HW = H * W

    # Lane tile: multiple of 128, capped at max_tile; pad HW up to a whole
    # number of tiles (padded columns are zero -> harmless, sliced off below).
    tile = min(max_tile, _round_up(HW, 128))
    hw_pad = _round_up(HW, tile)

    x3d = x_nchw.reshape(N, Cin, HW)          # free reshape for NCHW layout
    if hw_pad != HW:
        x3d = jnp.pad(x3d, ((0, 0), (0, 0), (0, hw_pad - HW)))

    w2d = weight.reshape(Cout, Cin)           # [Cout, Cin]
    b2d = bias.reshape(Cout, 1)               # [Cout, 1]

    grid = (N, hw_pad // tile)

    out3d = pl.pallas_call(
        _conv1x1_sigmoid_kernel,
        out_shape=jax.ShapeDtypeStruct((N, Cout, hw_pad), x_nchw.dtype),
        grid=grid,
        in_specs=[
            # activations: one batch element, one spatial tile per grid point
            pl.BlockSpec((1, Cin, tile), lambda n, j: (n, 0, j)),
            # weight / bias: same (only) block everywhere -> stay in VMEM
            pl.BlockSpec((Cout, Cin), lambda n, j: (0, 0)),
            pl.BlockSpec((Cout, 1), lambda n, j: (0, 0)),
        ],
        out_specs=pl.BlockSpec((1, Cout, tile), lambda n, j: (n, 0, j)),
        compiler_params=pltpu.CompilerParams(
            # both axes are independent row/column work -> megacore-shardable
            dimension_semantics=("parallel", "parallel"),
        ),
    )(x3d, w2d, b2d)

    if hw_pad != HW:
        out3d = out3d[:, :, :HW]
    return out3d.reshape(N, Cout, H, W)


def _reference(x, weight, bias):
    Cout, Cin = weight.shape[0], weight.shape[1]
    return jax.nn.sigmoid(
        jnp.einsum("nchw,oc->nohw", x, weight.reshape(Cout, Cin))
        + bias.reshape(1, Cout, 1, 1)
    )


if __name__ == "__main__":
    key = jax.random.PRNGKey(0)
    k_x, k_w, k_b, k_x2 = jax.random.split(key, 4)

    Cin, Cout = 12, 104

    # Deterministic synthetic parameters matching Conv2d(12, 104, 1).
    weight = jax.random.normal(k_w, (Cout, Cin, 1, 1), dtype=jnp.float32) * 0.1
    bias = jax.random.normal(k_b, (Cout,), dtype=jnp.float32) * 0.1

    # 1) Exact spec shape: [1, 12, 1, 1]  (HW padded internally to 128).
    x_small = jax.random.normal(k_x, (1, Cin, 1, 1), dtype=jnp.float32)
    out_small = conv1x1_sigmoid(x_small, weight, bias)
    jax.block_until_ready(out_small)
    ref_small = _reference(x_small, weight, bias)
    assert out_small.shape == (1, Cout, 1, 1)
    assert jnp.allclose(out_small, ref_small, atol=1e-5, rtol=1e-5)

    # 2) Larger spatial input to exercise multi-tile grid + tail padding.
    x_big = jax.random.normal(k_x2, (2, Cin, 24, 24), dtype=jnp.float32)
    out_big = conv1x1_sigmoid(x_big, weight, bias)
    jax.block_until_ready(out_big)
    ref_big = _reference(x_big, weight, bias)
    assert out_big.shape == (2, Cout, 24, 24)
    assert jnp.allclose(out_big, ref_big, atol=1e-5, rtol=1e-5)

    print("KERNEL_OK")
</pallas_src>

<mosaic_0001>
module attributes {stable_mosaic.version = 11 : i64} {
  func.func @_conv1x1_sigmoid_kernel(%arg0: i32, %arg1: i32, %arg2: memref<1x12x128xf32, #tpu.memory_space<vmem>>, %arg3: memref<104x12xf32, #tpu.memory_space<vmem>>, %arg4: memref<104x1xf32, #tpu.memory_space<vmem>>, %arg5: memref<1x104x128xf32, #tpu.memory_space<vmem>>) attributes {dimension_semantics = [#tpu.dimension_semantics<parallel>, #tpu.dimension_semantics<parallel>], iteration_bounds = array<i64: 1, 1>, scalar_prefetch = 0 : i64, scratch_operands = 0 : i64, tpu.core_type = #tpu.core_type<tc>, window_params = [{transform_indices = @transform_0, window_bounds = array<i64: 1, 12, 128>}, {pipeline_mode = #tpu.pipeline_mode<synchronous>, transform_indices = @transform_1, window_bounds = array<i64: 104, 12>}, {pipeline_mode = #tpu.pipeline_mode<synchronous>, transform_indices = @transform_2, window_bounds = array<i64: 104, 1>}, {transform_indices = @transform_3, window_bounds = array<i64: 1, 104, 128>}]} {
    %c0 = arith.constant 0 : index
    %c0_0 = arith.constant 0 : index
    %c0_1 = arith.constant 0 : index
    %0 = vector.load %arg2[%c0, %c0_0, %c0_1] : memref<1x12x128xf32, #tpu.memory_space<vmem>>, vector<1x12x128xf32>
    %1 = vector.shape_cast %0 : vector<1x12x128xf32> to vector<12x128xf32>
    %c0_2 = arith.constant 0 : index
    %c0_3 = arith.constant 0 : index
    %2 = vector.load %arg3[%c0_2, %c0_3] : memref<104x12xf32, #tpu.memory_space<vmem>>, vector<104x12xf32>
    %cst = arith.constant dense<0.000000e+00> : vector<104x128xf32>
    %3 = tpu.matmul %2, %1, %cst {dimension_numbers = #tpu.dot_dimension_numbers<[1], [0], [0], [1], [0, 0, 1, 1], [], []>} : vector<104x12xf32>, vector<12x128xf32>, vector<104x128xf32> -> vector<104x128xf32>
    %c0_4 = arith.constant 0 : index
    %c0_5 = arith.constant 0 : index
    %4 = vector.load %arg4[%c0_4, %c0_5] : memref<104x1xf32, #tpu.memory_space<vmem>>, vector<104x1xf32>
    %5 = vector.broadcast %4 : vector<104x1xf32> to vector<104x128xf32>
    %6 = arith.addf %3, %5 : vector<104x128xf32>
    %7 = arith.negf %6 : vector<104x128xf32>
    %8 = math.exp %7 : vector<104x128xf32>
    %cst_6 = arith.constant 1.000000e+00 : f32
    %9 = vector.broadcast %cst_6 : f32 to vector<104x128xf32>
    %10 = arith.addf %9, %8 : vector<104x128xf32>
    %11 = arith.divf %9, %10 : vector<104x128xf32>
    %c0_7 = arith.constant 0 : index
    %c0_8 = arith.constant 0 : index
    %c0_9 = arith.constant 0 : index
    %12 = vector.load %arg5[%c0_7, %c0_8, %c0_9] : memref<1x104x128xf32, #tpu.memory_space<vmem>>, vector<1x104x128xf32>
    %13 = vector.shape_cast %12 : vector<1x104x128xf32> to vector<104x128xf32>
    %14 = vector.shape_cast %11 : vector<104x128xf32> to vector<1x104x128xf32>
    tpu.vector_store %arg5[%c0_7, %c0_8, %c0_9], %14 {strides = array<i32>} : memref<1x104x128xf32, #tpu.memory_space<vmem>>, vector<1x104x128xf32>,
    return
  }
  func.func @transform_0(%arg0: i32, %arg1: i32) -> (i32, i32, i32) {
    %c0_i32 = arith.constant 0 : i32
    %c0_i32_0 = arith.constant 0 : i32
    return %arg0, %c0_i32, %arg1 : i32, i32, i32
  }
  func.func @transform_1(%arg0: i32, %arg1: i32) -> (i32, i32) {
    %c0_i32 = arith.constant 0 : i32
    %c0_i32_0 = arith.constant 0 : i32
    %c0_i32_1 = arith.constant 0 : i32
    return %c0_i32, %c0_i32_0 : i32, i32
  }
  func.func @transform_2(%arg0: i32, %arg1: i32) -> (i32, i32) {
    %c0_i32 = arith.constant 0 : i32
    %c0_i32_0 = arith.constant 0 : i32
    %c0_i32_1 = arith.constant 0 : i32
    return %c0_i32, %c0_i32_0 : i32, i32
  }
  func.func @transform_3(%arg0: i32, %arg1: i32) -> (i32, i32, i32) {
    %c0_i32 = arith.constant 0 : i32
    %c0_i32_0 = arith.constant 0 : i32
    return %arg0, %c0_i32, %arg1 : i32, i32, i32
  }
}

</mosaic_0001>

<bundles_post_ra>
// kernel: tpu_custom_call.1
= control target key start
LH: loop header
LB: loop body
LE: loop exit
PB: predicated region body
PF: predicated region fallthrough
CT: control target
= control target key end

     0   :  { %vm148_vm0 = vcmask 1043456   ;;  %v560_v1 = vmov 0.0   ;;  %vm108_vm1 = vcmask 97280   ;;  %vm561_vm2 = vmmov 0   ;;  %s722_s0 = inlined_call_operand.vmem [shape: f32[1,12,128], index: 0, kind: input, shape index: {}]   ;;  %s723_s1 = inlined_call_operand.vmem [shape: f32[104,12], index: 1, kind: input, shape index: {}]   ;;  %s724_s2 = inlined_call_operand.vmem [shape: f32[104,1], index: 2, kind: input, shape index: {}]   ;;  %s725_s3 = inlined_call_operand.hbm [shape: f32[1,104,128], index: 3, kind: output, shape index: {}]  }
   0x1   :  { %v16_v0 = vld [vmem:[%s722_s0 + $0x8] sm:$0xf]  ;;  %431 = vmatprep.subr.mxu0 %v560_v1  ;;  %474 = vmatprep.subr.mxu1 %v560_v1  ;;  %v15_v2 = vld [vmem:[%s722_s0] sm:$0xff]  ;;  %v24_v4 = vld [vmem:[%s723_s1 + $0x38] sm:$0xff]  ;;  %v562_v9 = vmov 0  }
   0x2   :  { %432 = vmatpush3.msk.msra.mxu0 %vm148_vm0, %v16_v0  ;;  %476 = vmatpush3.msk.msra.mxu1 %vm148_vm0, %v16_v0  ;;  %v17_v3 = vld [vmem:[%s723_s1] sm:$0xff]  ;;  %v32_v6 = vld [vmem:[%s724_s2 + $0x10] sm:$0xff]  ;;  %v18_v7 = vld [vmem:[%s723_s1 + $0x8] sm:$0xff] }
   0x3   :  { %433 = vmatprep.subr.mxu0 %v560_v1  ;;  %475 = vmatprep.subr.mxu1 %v560_v1  ;;  %v30_v5 = vld [vmem:[%s724_s2] sm:$0xff] }
   0x4   :  { %434 = vmatpush3.msra.mxu0 %v15_v2  ;;  %477 = vmatpush3.msra.mxu1 %v15_v2  ;;  %v25_v8 = vld [vmem:[%s723_s1 + $0x40] sm:$0xff] }
   0x5   :  { %435 = vmatprep.mubr.msk.f32.mxu0 %vm561_vm2, %v560_v1  ;;  %456 = vmatprep.mubr.msk.f32.mxu1 %vm561_vm2, %v560_v1 }
   0x6   :  { %436 = vmatmul.mubr.msk.f32.vlgmr.msra.gmra.mxu0 %vm108_vm1, %v17_v3  ;;  %457 = vmatmul.mubr.msk.f32.vlgmr.msra.gmra.mxu1 %vm108_vm1, %v24_v4 }
   0x7   :  { %438 = vmatprep.mubr.msk.f32.mxu0 %vm561_vm2, %v560_v1  ;;  %459 = vmatprep.mubr.msk.f32.mxu1 %vm561_vm2, %v560_v1 }
   0x8   :  { %484 = vset.pattern.permute.xlu0 %v562_v9  ;;  %485 = vset.pattern.permute.xlu1 %v562_v9 }
   0x9   :  { %45 = vperm.xlu0 %484, %v30_v5   ;;  %55 = vperm.xlu1 %485, %v32_v6  }
   0xa   :  { %8 = vsyncpa [#allocation3], 0  ;;  %439 = vmatmul.mubr.msk.f32.gmra.mxu0 %vm108_vm1, %v18_v7  ;;  %460 = vmatmul.mubr.msk.f32.gmra.mxu1 %vm108_vm1, %v25_v8  ;;  %v31_v10 = vld [vmem:[%s724_s2 + $0x8] sm:$0xff]  ;;  %v33_v11 = vld [vmem:[%s724_s2 + $0x18] sm:$0xff] }
   0xb   :  { %441 = vmatprep.mubr.msk.f32.mxu0 %vm561_vm2, %v560_v1  ;;  %462 = vmatprep.mubr.msk.f32.mxu1 %vm561_vm2, %v560_v1  ;;  %v19_v12 = vld [vmem:[%s723_s1 + $0x10] sm:$0xff]  ;;  %v26_v13 = vld [vmem:[%s723_s1 + $0x48] sm:$0xff]  ;;  %v34_v14 = vld [vmem:[%s724_s2 + $0x20] sm:$0xff] }
   0xc   :  { %v35_v15 = vld [vmem:[%s724_s2 + $0x28] sm:$0xff]  ;;  %v20_v16 = vld [vmem:[%s723_s1 + $0x18] sm:$0xff]  ;;  %v27_v17 = vld [vmem:[%s723_s1 + $0x50] sm:$0xff] }
   0xd   :  { %50 = vperm.xlu0 %484, %v31_v10   ;;  %60 = vperm.xlu1 %485, %v33_v11   ;;  %v36_v18 = vld [vmem:[%s724_s2 + $0x30] sm:$0xff]  ;;  %v37_v19 = vld [vmem:[%s724_s2 + $0x38] sm:$0xff]  ;;  %v21_v20 = vld [vmem:[%s723_s1 + $0x20] sm:$0xff] }
   0xe   :  { %442 = vmatmul.mubr.msk.f32.gmra.mxu0 %vm108_vm1, %v19_v12  ;;  %463 = vmatmul.mubr.msk.f32.gmra.mxu1 %vm108_vm1, %v26_v13  ;;  %v28_v21 = vld [vmem:[%s723_s1 + $0x58] sm:$0xff]  ;;  %v38_v22 = vld [vmem:[%s724_s2 + $0x40] sm:$0xff]  ;;  %v39_v23 = vld [vmem:[%s724_s2 + $0x48] sm:$0xff] }
   0xf   :  { %444 = vmatprep.mubr.msk.f32.mxu0 %vm561_vm2, %v560_v1  ;;  %465 = vmatprep.mubr.msk.f32.mxu1 %vm561_vm2, %v560_v1  ;;  %v22_v24 = vld [vmem:[%s723_s1 + $0x28] sm:$0xff]  ;;  %v29_v25 = vld [vmem:[%s723_s1 + $0x60] sm:$0xff]  ;;  %v40_v26 = vld [vmem:[%s724_s2 + $0x50] sm:$0xff] }
  0x10   :  { %v41_v27 = vld [vmem:[%s724_s2 + $0x58] sm:$0xff]  ;;  %v23_v28 = vld [vmem:[%s723_s1 + $0x30] sm:$0xff]  ;;  %v42_v29 = vld [vmem:[%s724_s2 + $0x60] sm:$0xff]  ;;  %s563_s1 = smov [#allocation2]  }
  0x11   :  { %65 = vperm.xlu0 %484, %v34_v14   ;;  %70 = vperm.xlu1 %485, %v35_v15   ;;  %s378_s2 = sshll.u32 %s563_s1, 4  ;;  %s379_s2 = int_to_ptr.vmem [resolvable:$true] %s378_s2 }
  0x12   :  { %445 = vmatmul.mubr.msk.f32.gmra.mxu0 %vm108_vm1, %v20_v16  ;;  %466 = vmatmul.mubr.msk.f32.gmra.mxu1 %vm108_vm1, %v27_v17  ;;  %s538_s12 = scalar_lea.vmem %s379_s2, 1664  ;;  %p543_p1 = scmp.lt.s32.totalorder %s379_s2, %s379_s2 }
  0x13   :  { %447 = vmatprep.mubr.msk.f32.mxu0 %vm561_vm2, %v560_v1  ;;  %468 = vmatprep.mubr.msk.f32.mxu1 %vm561_vm2, %v560_v1  ;;  %p539_p0 = scmp.ne.s32.totalorder %s379_s2, %s538_s12  ;;  %p544_p2 = scmp.lt.s32.totalorder %s538_s12, %s538_s12 }
  0x15   :  { %75 = vperm.xlu0 %484, %v36_v18   ;;  %80 = vperm.xlu1 %485, %v37_v19   ;;  %p545_p3 = por %p544_p2, %p543_p1 }
  0x16   :  { %448 = vmatmul.mubr.msk.f32.gmra.mxu0 %vm108_vm1, %v21_v20  ;;  %469 = vmatmul.mubr.msk.f32.gmra.mxu1 %vm108_vm1, %v28_v21 }
  0x17   :  { %450 = vmatprep.mubr.msk.f32.mxu0 %vm561_vm2, %v560_v1  ;;  %471 = vmatprep.mubr.msk.f32.mxu1 %vm561_vm2, %v560_v1  ;;  %p546_p4 = pnand %p545_p3, %p539_p0 }
  0x19   :  { %85 = vperm.xlu0 %484, %v38_v22   ;;  %90 = vperm.xlu1 %485, %v39_v23  }
  0x1a   :  { %451 = vmatmul.mubr.msk.f32.gmra.mxu0 %vm108_vm1, %v22_v24  ;;  %472 = vmatmul.mubr.msk.f32.gmra.mxu1 %vm108_vm1, %v29_v25 }
  0x1b   :  { %453 = vmatprep.mubr.msk.f32.mxu0 %vm561_vm2, %v560_v1 }
  0x1d   :  { %95 = vperm.xlu0 %484, %v40_v26   ;;  %100 = vperm.xlu1 %485, %v41_v27  }
  0x1e   :  { %454 = vmatmul.mubr.msk.f32.gmra.mxu0 %vm108_vm1, %v23_v28 }
  0x21   :  { %105 = vperm.xlu0 %484, %v42_v29  }
  0x84   :  { %v46_v30 = vpop.permute.xlu0 %45  ;;  %v56_v31 = vpop.permute.xlu1 %55 }
  0x88   :  { %v51_v32 = vpop.permute.xlu0 %50  ;;  %v61_v33 = vpop.permute.xlu1 %60 }
  0x8c   :  { %v66_v34 = vpop.permute.xlu0 %65  ;;  %v713_v35 = vpop.permute.xlu1 %70 }
  0x90   :  { %v715_v36 = vpop.permute.xlu0 %75  ;;  %v81_v37 = vpop.permute.xlu1 %80 }
  0x94   :  { %v86_v44 = vpop.permute.xlu0 %85  ;;  %v91_v53 = vpop.permute.xlu1 %90 }
  0x98   :  { %v96_v62 = vpop.permute.xlu0 %95  ;;  %v101_v7 = vpop.permute.xlu1 %100 }
  0x9c   :  { %v106_v18 = vpop.permute.xlu0 %105 }
  0xc6   :  { %v218_v38 = vpop.f32.mrf.mxu0  ;;  %v253_v39 = vpop.f32.mrf.mxu1 }
  0xc7   :  { %v219_v40 = vadd.f32 %v218_v38, %v46_v30  ;;  %v254_v41 = vadd.f32 %v253_v39, %v81_v37 }
  0xc8   :  { %v437_v42 = vpop.f32.mrf.mxu0  ;;  %v458_v43 = vpop.f32.mrf.mxu1 }
  0xc9   :  { %v403_v45 = vmul.f32 -1.442695, %v219_v40  ;;  %v410_v46 = vmul.f32 -1.442695, %v254_v41 }
  0xca   :  { %v223_v47 = vpop.f32.mrf.mxu0  ;;  %v258_v48 = vpop.f32.mrf.mxu1 }
  0xcb   :  { %486 = vpow2.f32 %v403_v45  ;;  %v224_v49 = vadd.f32 %v223_v47, %v51_v32  ;;  %v259_v50 = vadd.f32 %v258_v48, %v86_v44 }
  0xcc   :  { %488 = vpow2.f32 %v410_v46  ;;  %v440_v51 = vpop.f32.mrf.mxu0  ;;  %v461_v52 = vpop.f32.mrf.mxu1 }
  0xcd   :  { %v404_v54 = vmul.f32 -1.442695, %v224_v49  ;;  %v411_v55 = vmul.f32 -1.442695, %v259_v50 }
  0xce   :  { %v228_v56 = vpop.f32.mrf.mxu0  ;;  %v263_v57 = vpop.f32.mrf.mxu1 }
  0xcf   :  { %490 = vpow2.f32 %v404_v54  ;;  %v229_v58 = vadd.f32 %v228_v56, %v56_v31  ;;  %v264_v59 = vadd.f32 %v263_v57, %v91_v53 }
  0xd0   :  { %492 = vpow2.f32 %v411_v55  ;;  %v443_v60 = vpop.f32.mrf.mxu0  ;;  %v464_v61 = vpop.f32.mrf.mxu1 }
  0xd1   :  { %v405_v63 = vmul.f32 -1.442695, %v229_v58  ;;  %v412_v0 = vmul.f32 -1.442695, %v264_v59 }
  0xd2   :  { %v233_v1 = vpop.f32.mrf.mxu0  ;;  %v268_v2 = vpop.f32.mrf.mxu1 }
  0xd3   :  { %494 = vpow2.f32 %v405_v63  ;;  %v234_v3 = vadd.f32 %v233_v1, %v61_v33  ;;  %v269_v4 = vadd.f32 %v268_v2, %v96_v62 }
  0xd4   :  { %496 = vpow2.f32 %v412_v0  ;;  %v446_v5 = vpop.f32.mrf.mxu0  ;;  %v467_v6 = vpop.f32.mrf.mxu1 }
  0xd5   :  { %v406_v8 = vmul.f32 -1.442695, %v234_v3  ;;  %v413_v9 = vmul.f32 -1.442695, %v269_v4 }
  0xd6   :  { %v238_v10 = vpop.f32.mrf.mxu0  ;;  %v273_v11 = vpop.f32.mrf.mxu1 }
  0xd7   :  { %498 = vpow2.f32 %v406_v8  ;;  %v239_v12 = vadd.f32 %v238_v10, %v66_v34  ;;  %v274_v13 = vadd.f32 %v273_v11, %v101_v7 }
  0xd8   :  { %v487_v14 = vpop.eup %486  ;;  %500 = vpow2.f32 %v413_v9  ;;  %v449_v15 = vpop.f32.mrf.mxu0 }
  0xd9   :  { %v470_v16 = vpop.f32.mrf.mxu1  ;;  %v489_v17 = vpop.eup %488  ;;  %v321_v19 = vadd.f32 1.0, %v487_v14  ;;  %v407_v20 = vmul.f32 -1.442695, %v239_v12  ;;  %v414_v22 = vmul.f32 -1.442695, %v274_v13 }
  0xda   :  { %v328_v21 = vadd.f32 1.0, %v489_v17  ;;  %v243_v23 = vpop.f32.mrf.mxu0 }
  0xdb   :  { %v278_v24 = vpop.f32.mrf.mxu1  ;;  %502 = vrcp.f32 %v321_v19  ;;  %v244_v25 = vadd.f32 %v243_v23, %v713_v35 }
  0xdc   :  { %v279_v26 = vadd.f32 %v278_v24, %v106_v18  ;;  %v491_v27 = vpop.eup %490  ;;  %504 = vrcp.f32 %v328_v21  ;;  %v452_v28 = vpop.f32.mrf.mxu0 }
  0xdd   :  { %v473_v29 = vpop.f32.mrf.mxu1  ;;  %v493_v30 = vpop.eup %492  ;;  %v322_v31 = vadd.f32 1.0, %v491_v27  ;;  %506 = vpow2.f32 %v407_v20  ;;  %v408_v32 = vmul.f32 -1.442695, %v244_v25 }
  0xde   :  { %v329_v33 = vadd.f32 1.0, %v493_v30  ;;  %508 = vpow2.f32 %v414_v22  ;;  %v415_v34 = vmul.f32 -1.442695, %v279_v26  ;;  %v248_v37 = vpop.f32.mrf.mxu0 }
  0xdf   :  { %510 = vrcp.f32 %v322_v31  ;;  %v249_v38 = vadd.f32 %v248_v37, %v715_v36 }
  0xe0   :  { %v495_v39 = vpop.eup %494  ;;  %512 = vrcp.f32 %v329_v33  ;;  %v455_v40 = vpop.f32.mrf.mxu0 }
  0xe1   :  { %v497_v35 = vpop.eup %496  ;;  %v323_v41 = vadd.f32 1.0, %v495_v39  ;;  %514 = vpow2.f32 %v408_v32  ;;  %v409_v42 = vmul.f32 -1.442695, %v249_v38 }
  0xe2   :  { %v330_v43 = vadd.f32 1.0, %v497_v35  ;;  %516 = vpow2.f32 %v415_v34 }
  0xe3   :  { %518 = vrcp.f32 %v323_v41 }
  0xe4   :  { %v499_v44 = vpop.eup %498  ;;  %520 = vrcp.f32 %v330_v43 }
  0xe5   :  { %v501_v45 = vpop.eup %500  ;;  %v324_v46 = vadd.f32 1.0, %v499_v44  ;;  %522 = vpow2.f32 %v409_v42 }
  0xe6   :  { %v331_v47 = vadd.f32 1.0, %v501_v45 }
  0xe7   :  { %524 = vrcp.f32 %v324_v46 }
  0xe8   :  { %v503_v48 = vpop.eup %502  ;;  %526 = vrcp.f32 %v331_v47 }
  0xe9   :  { %v505_v36 = vpop.eup %504  ;;  %360 = vst [vmem:[#allocation2] sm:$0xff] %v503_v48 }
  0xea   :  { %v507_v49 = vpop.eup %506  ;;  %367 = vst [vmem:[#allocation2 + $0x38] sm:$0xff] %v505_v36 }
  0xeb   :  { %v509_v50 = vpop.eup %508  ;;  %v325_v51 = vadd.f32 1.0, %v507_v49 }
  0xec   :  { %v511_v52 = vpop.eup %510  ;;  %v332_v53 = vadd.f32 1.0, %v509_v50 }
  0xed   :  { %v513_v54 = vpop.eup %512  ;;  %361 = vst [vmem:[#allocation2 + $0x8] sm:$0xff] %v511_v52  ;;  %528 = vrcp.f32 %v325_v51 }
  0xee   :  { %v515_v55 = vpop.eup %514  ;;  %368 = vst [vmem:[#allocation2 + $0x40] sm:$0xff] %v513_v54  ;;  %530 = vrcp.f32 %v332_v53 }
  0xef   :  { %v517_v56 = vpop.eup %516  ;;  %v326_v57 = vadd.f32 1.0, %v515_v55 }
  0xf0   :  { %v519_v58 = vpop.eup %518  ;;  %v333_v59 = vadd.f32 1.0, %v517_v56 }
  0xf1   :  { %v521_v60 = vpop.eup %520  ;;  %362 = vst [vmem:[#allocation2 + $0x10] sm:$0xff] %v519_v58  ;;  %532 = vrcp.f32 %v326_v57 }
  0xf2   :  { %v523_v61 = vpop.eup %522  ;;  %369 = vst [vmem:[#allocation2 + $0x48] sm:$0xff] %v521_v60  ;;  %534 = vrcp.f32 %v333_v59 }
  0xf3   :  { %v327_v62 = vadd.f32 1.0, %v523_v61 }
  0xf4   :  { %v525_v63 = vpop.eup %524 }
  0xf5   :  { %v527_v0 = vpop.eup %526  ;;  %363 = vst [vmem:[#allocation2 + $0x18] sm:$0xff] %v525_v63  ;;  %536 = vrcp.f32 %v327_v62 }
  0xf6   :  { %370 = vst [vmem:[#allocation2 + $0x50] sm:$0xff] %v527_v0 }
  0xfa   :  { %v529_v1 = vpop.eup %528 }
  0xfb   :  { %v531_v2 = vpop.eup %530  ;;  %364 = vst [vmem:[#allocation2 + $0x20] sm:$0xff] %v529_v1 }
  0xfc   :  { %371 = vst [vmem:[#allocation2 + $0x58] sm:$0xff] %v531_v2 }
  0xfe   :  { %v533_v3 = vpop.eup %532 }
  0xff   :  { %v535_v4 = vpop.eup %534  ;;  %365 = vst [vmem:[#allocation2 + $0x28] sm:$0xff] %v533_v3 }
 0x100   :  { %372 = vst [vmem:[#allocation2 + $0x60] sm:$0xff] %v535_v4 }
 0x102   :  { %v537_v5 = vpop.eup %536 }
 0x103   :  { %366 = vst [vmem:[#allocation2 + $0x30] sm:$0xff] %v537_v5 }
 0x104   :  { %549 = shalt.err (!%p546_p4)
}
 0x105   :  { %s564_s13 = smov 128   ;;  %s565_s14 = smov 8  }
 0x106   :  { %384 = dma.vmem_to_hbm [thread:$0]  %s379_s2, 1664, %s725_s3, [#allocation3], %s564_s13, %s564_s13, %s565_s14  }
 0x107   :  { %558 = dma.done.wait [#allocation3], 1664  }
 0x108   :  { %559 = vsyncadd [#allocation3], 4294965632 }
 0x109   :  { %388 = vsyncpa [#allocation3], 1 }

</bundles_post_ra>
